<compile_context>
chip_gen: v7x
topology: tpu7x:2x2x1
jax: 0.10.0
libtpu: 0.0.40
codegen_flags: <defaults>
</compile_context>

<pallas_src>
import functools

import jax
import jax.numpy as jnp
from jax.experimental import pallas as pl
from jax.experimental.pallas import tpu as pltpu

EPS = 1e-6


def _round_up(n, m):
    return ((n + m - 1) // m) * m


def _cdiv(a, b):
    return (a + b - 1) // b


def _vmem_limit(estimate_bytes):
    # Explicit scoped-VMEM limit computed from tile arithmetic (+ headroom),
    # instead of relying on the 16/32 MiB defaults.
    return int(min(128 << 20, max(32 << 20, int(estimate_bytes) + (8 << 20))))


def _choose_tm(m, tm_max, min_row_blocks=2):
    """Row tile: 8-aligned, <= tm_max, and (when possible) >= min_row_blocks
    grid steps so the 'parallel' row axis can shard across TensorCores and the
    pipeline has iterations to overlap DMA with compute."""
    tm = min(tm_max, _round_up(m, 8))
    while tm > 8 and _cdiv(m, tm) < min_row_blocks:
        tm = max(8, _round_up(tm // 2, 8))
    return tm


def _choose_tn(h_pad, w_itemsize, tn, resident_budget, block_budget):
    """None => W fully resident in VMEM; otherwise the W output-column tile."""
    if tn is not None:
        if tn >= h_pad:
            return None
        if tn % 128 != 0 or h_pad % tn != 0:
            raise ValueError("tn must be a multiple of 128 that divides the "
                             "padded hidden size")
        return tn
    if h_pad * h_pad * w_itemsize <= resident_budget:
        return None
    best = 128
    t = 256
    while t <= h_pad:
        if h_pad % t == 0 and h_pad * t * w_itemsize <= block_budget:
            best = t
        t += 128
    return best


# ---------------------------------------------------------------------------
# Shared LayerNorm row statistics (PyTorch-module numerics, padded-lane aware)
# ---------------------------------------------------------------------------
def _layernorm_rows(xf, h_true):
    """Row stats for a (TM, H_pad) f32 tile; lanes >= h_true are zero padding.

    Returns (d, inv): d = xf - mean (padded lanes hold -mean; callers multiply
    by a zero-padded gamma so they never leak) and inv = 1 / (std + eps) with
    the *unbiased* std (divide by H-1), matching torch.std + the module's eps
    placement.
    """
    _, h_pad = xf.shape
    mean = jnp.sum(xf, axis=-1, keepdims=True) * (1.0 / h_true)
    d = xf - mean
    sq = jnp.sum(d * d, axis=-1, keepdims=True)
    if h_pad != h_true:
        # Padded lanes each contribute (0 - mean)^2; remove them algebraically
        # instead of an iota/compare/select mask (saves 3 full-tile VPU ops).
        # Mild cancellation if |mean| >> std; real transformer dims have
        # H % 128 == 0 and never take this branch.
        sq = sq - float(h_pad - h_true) * (mean * mean)
    var = sq * (1.0 / (h_true - 1))
    denom = jnp.sqrt(var) + EPS
    # EUP reciprocal (separate VLIW slot) + one Newton step ~ f32 accuracy,
    # instead of a per-element VPU divide.
    inv = pl.reciprocal(denom, approx=True)
    inv = inv * (2.0 - denom * inv)
    return d, inv


def _ln_scaled(x_ref, g_ref, h_true):
    """(x - mean) / (std + eps) * gamma   (beta is folded into the Linear bias)."""
    xf = x_ref[...].astype(jnp.float32)
    d, inv = _layernorm_rows(xf, h_true)
    return d * inv * g_ref[...].astype(jnp.float32)


# ---------------------------------------------------------------------------
# Fused kernels: LayerNorm -> Linear(H,H) on the MXU -> +bias' -> +residual
# ---------------------------------------------------------------------------
def _fused_resident_kernel(x_ref, g_ref, fb_ref, w_ref, o_ref, *, h_true):
    """W fully resident; grid is over row blocks only."""
    normed = _ln_scaled(x_ref, g_ref, h_true)            # (TM, H_pad) f32
    y = jnp.dot(normed.astype(w_ref.dtype), w_ref[...],
                preferred_element_type=jnp.float32)      # MXU
    y = y + fb_ref[...].astype(jnp.float32)
    # Residual re-reads x here: no f32 x-tile copy stays live across the MXU op.
    o_ref[...] = (x_ref[...].astype(jnp.float32) + y).astype(o_ref.dtype)


def _fused_streaming_kernel(x_ref, xr_ref, g_ref, fb_ref, w_ref, o_ref,
                            normed_ref, *, h_true):
    """W streamed in (H_pad, TN) column blocks over the trailing grid axis.

    The column axis is sequential per row block ("arbitrary"), so the
    LayerNorm result is computed once per row block at n == 0 into a VMEM
    scratch and reused for every W column block (full-K dot per step -> no
    accumulator needed; the output block is written exactly once).
    """
    @pl.when(pl.program_id(1) == 0)
    def _():
        normed_ref[...] = _ln_scaled(x_ref, g_ref, h_true).astype(normed_ref.dtype)

    y = jnp.dot(normed_ref[...], w_ref[...],
                preferred_element_type=jnp.float32)      # (TM, TN)
    y = y + fb_ref[...].astype(jnp.float32)
    o_ref[...] = (xr_ref[...].astype(jnp.float32) + y).astype(o_ref.dtype)


def sublayer_connection_linear(x, a_2, b_2, W, bias, *, tm=256, tn=None,
                               matmul_dtype=None,
                               resident_w_bytes=8 << 20,
                               w_block_bytes=4 << 20):
    """Fused forward: x + Linear(LayerNorm(x)); dropout = identity (eval mode).

    Single Pallas kernel: LayerNorm -> (H x H) matmul -> +bias -> +residual.
    Small W stays VMEM-resident; large W is streamed in output-column blocks
    so the kernel fits v7x's 64 MiB VMEM at real hidden sizes.  LayerNorm beta
    is folded into the Linear bias (bias' = bias + b_2 @ W).  Set
    matmul_dtype=jnp.bfloat16 to run the MXU matmul in bf16 (f32 accumulate).
    """
    B, S, H = x.shape
    M = B * S
    mm_dtype = jnp.dtype(matmul_dtype) if matmul_dtype is not None else jnp.dtype(x.dtype)
    xb = jnp.dtype(x.dtype).itemsize
    wb = mm_dtype.itemsize

    h_pad = _round_up(H, 128)                      # lane-dense (unmasked vst)
    tm_eff = _choose_tm(M, tm)
    m_pad = _round_up(M, tm_eff)
    tn_eff = _choose_tn(h_pad, wb, tn, resident_w_bytes, w_block_bytes)

    # Fold LayerNorm beta through the affine sublayer (free algebraic win).
    fb = bias.astype(jnp.float32) + jnp.dot(b_2.astype(jnp.float32),
                                            W.astype(jnp.float32))

    # Pad only when shapes don't already conform (H % 128 == 0, M % TM == 0
    # for real transformer dims -> zero-copy path, no extra HBM round-trips).
    x2 = x.reshape(M, H)
    if m_pad != M or h_pad != H:
        x2 = jnp.pad(x2, ((0, m_pad - M), (0, h_pad - H)))
    g2 = a_2.reshape(1, H)
    fb2 = fb.reshape(1, H)
    W2 = W.astype(mm_dtype)
    if h_pad != H:
        g2 = jnp.pad(g2, ((0, 0), (0, h_pad - H)))
        fb2 = jnp.pad(fb2, ((0, 0), (0, h_pad - H)))
        W2 = jnp.pad(W2, ((0, h_pad - H), (0, h_pad - H)))

    rows = m_pad // tm_eff
    out_shape = jax.ShapeDtypeStruct((m_pad, h_pad), x.dtype)

    if tn_eff is None:
        # --------------------- W fully resident in VMEM ---------------------
        # TODO(synk): pipeline_mode=pl.Buffered(1) on the grid-invariant
        #             W/gamma/bias specs would drop their second pipeline
        #             buffer; cross-pallas_call prefetch of W would hide the
        #             first weight DMA between transformer layers.
        est = (4 * tm_eff * h_pad * xb            # x + out tiles, 2 buffers
               + 2 * h_pad * h_pad * wb           # W (double buffered)
               + 4 * h_pad * 4                    # gamma + bias'
               + 4 * tm_eff * h_pad * 4)          # f32 temporaries
        out = pl.pallas_call(
            functools.partial(_fused_resident_kernel, h_true=H),
            out_shape=out_shape,
            grid_spec=pltpu.PrefetchScalarGridSpec(
                num_scalar_prefetch=0,
                grid=(rows,),
                in_specs=[
                    pl.BlockSpec((tm_eff, h_pad), lambda i: (i, 0)),   # x rows
                    pl.BlockSpec((1, h_pad), lambda i: (0, 0)),        # gamma
                    pl.BlockSpec((1, h_pad), lambda i: (0, 0)),        # bias'
                    pl.BlockSpec((h_pad, h_pad), lambda i: (0, 0)),    # W
                ],
                out_specs=pl.BlockSpec((tm_eff, h_pad), lambda i: (i, 0)),
            ),
            compiler_params=pltpu.CompilerParams(
                dimension_semantics=("parallel",),
                vmem_limit_bytes=_vmem_limit(est)),
        )(x2, g2, fb2, W2)
    else:
        # ----------------- W streamed in (H_pad, TN) column blocks ----------
        ncols = h_pad // tn_eff
        est = (2 * tm_eff * h_pad * xb            # x rows (revisited over n)
               + 4 * tm_eff * tn_eff * xb         # x residual view + out
               + 2 * h_pad * tn_eff * wb          # W column blocks
               + 4 * (h_pad + tn_eff) * 4         # gamma + bias'
               + tm_eff * h_pad * wb              # normed scratch
               + 4 * tm_eff * h_pad * 4)          # f32 temporaries at n == 0
        out = pl.pallas_call(
            functools.partial(_fused_streaming_kernel, h_true=H),
            out_shape=out_shape,
            grid_spec=pltpu.PrefetchScalarGridSpec(
                num_scalar_prefetch=0,
                grid=(rows, ncols),
                in_specs=[
                    pl.BlockSpec((tm_eff, h_pad), lambda i, n: (i, 0)),   # x rows (LN)
                    pl.BlockSpec((tm_eff, tn_eff), lambda i, n: (i, n)),  # x cols (residual)
                    pl.BlockSpec((1, h_pad), lambda i, n: (0, 0)),        # gamma
                    pl.BlockSpec((1, tn_eff), lambda i, n: (0, n)),       # bias'
                    pl.BlockSpec((h_pad, tn_eff), lambda i, n: (0, n)),   # W columns
                ],
                out_specs=pl.BlockSpec((tm_eff, tn_eff), lambda i, n: (i, n)),
                scratch_shapes=[pltpu.VMEM((tm_eff, h_pad), mm_dtype)],
            ),
            compiler_params=pltpu.CompilerParams(
                dimension_semantics=("parallel", "arbitrary"),
                vmem_limit_bytes=_vmem_limit(est)),
        )(x2, x2, g2, fb2, W2)

    if m_pad != M or h_pad != H:
        out = out[:M, :H]
    return out.reshape(B, S, H)


# ---------------------------------------------------------------------------
# Row-tiled LayerNorm kernel (for arbitrary, non-Linear sublayers)
# ---------------------------------------------------------------------------
def _layernorm_kernel(x_ref, g_ref, b_ref, o_ref, *, h_true):
    xf = x_ref[...].astype(jnp.float32)
    d, inv = _layernorm_rows(xf, h_true)
    o_ref[...] = (d * inv * g_ref[...].astype(jnp.float32)
                  + b_ref[...].astype(jnp.float32)).astype(o_ref.dtype)


def layernorm_pallas(x, a_2, b_2, *, tm=512):
    B, S, H = x.shape
    M = B * S
    xb = jnp.dtype(x.dtype).itemsize
    h_pad = _round_up(H, 128)
    tm_eff = _choose_tm(M, tm)
    m_pad = _round_up(M, tm_eff)

    x2 = x.reshape(M, H)
    if m_pad != M or h_pad != H:
        x2 = jnp.pad(x2, ((0, m_pad - M), (0, h_pad - H)))
    g2 = a_2.reshape(1, H)
    b2 = b_2.reshape(1, H)
    if h_pad != H:
        g2 = jnp.pad(g2, ((0, 0), (0, h_pad - H)))
        b2 = jnp.pad(b2, ((0, 0), (0, h_pad - H)))

    est = 4 * tm_eff * h_pad * xb + 8 * h_pad * 4 + 3 * tm_eff * h_pad * 4
    out = pl.pallas_call(
        functools.partial(_layernorm_kernel, h_true=H),
        out_shape=jax.ShapeDtypeStruct((m_pad, h_pad), x.dtype),
        grid_spec=pltpu.PrefetchScalarGridSpec(
            num_scalar_prefetch=0,
            grid=(m_pad // tm_eff,),
            in_specs=[
                pl.BlockSpec((tm_eff, h_pad), lambda i: (i, 0)),
                pl.BlockSpec((1, h_pad), lambda i: (0, 0)),
                pl.BlockSpec((1, h_pad), lambda i: (0, 0)),
            ],
            out_specs=pl.BlockSpec((tm_eff, h_pad), lambda i: (i, 0)),
        ),
        compiler_params=pltpu.CompilerParams(
            dimension_semantics=("parallel",),
            vmem_limit_bytes=_vmem_limit(est)),
    )(x2, g2, b2)
    if m_pad != M or h_pad != H:
        out = out[:M, :H]
    return out.reshape(B, S, H)


def sublayer_connection(x, sublayer_fn, a_2, b_2):
    """Generic path for an arbitrary `sublayer` callable.

    Prefer `sublayer_connection_linear` for Linear sublayers (full fusion).
    Here the residual add is left to XLA fusion with the sublayer epilogue.
    Dropout == identity (inference mode).
    """
    return x + sublayer_fn(layernorm_pallas(x, a_2, b_2))


# ---------------------------------------------------------------------------
# Pure-JAX reference (module semantics) for correctness checking
# ---------------------------------------------------------------------------
def _ref_forward(x, sublayer_fn, a_2, b_2):
    xf = x.astype(jnp.float32)
    mean = jnp.mean(xf, axis=-1, keepdims=True)
    d = xf - mean
    var = jnp.sum(d * d, axis=-1, keepdims=True) / (x.shape[-1] - 1)
    std = jnp.sqrt(var)
    normed = a_2 * d / (std + EPS) + b_2
    return x + sublayer_fn(normed.astype(x.dtype))


if __name__ == "__main__":
    root = jax.random.PRNGKey(0)

    def make_case(h, B=2, S=8):
        kx, kw, kb, ka, kbt = jax.random.split(jax.random.fold_in(root, h), 5)
        x = jax.random.normal(kx, (B, S, h), dtype=jnp.float32)
        a_2 = 1.0 + 0.1 * jax.random.normal(ka, (h,), dtype=jnp.float32)
        b_2 = 0.1 * jax.random.normal(kbt, (h,), dtype=jnp.float32)
        W = jax.random.normal(kw, (h, h), dtype=jnp.float32) * (h ** -0.5)
        bias = 0.01 * jax.random.normal(kb, (h,), dtype=jnp.float32)
        sub = lambda z: jnp.einsum("bsh,hk->bsk", z, W) + bias
        return x, a_2, b_2, W, bias, sub

    # 1) Small hidden (H=32): resident-W fused path + padded-lane LN variant.
    x, a_2, b_2, W, bias, sub = make_case(32)
    ref = _ref_forward(x, sub, a_2, b_2)
    out = jax.block_until_ready(sublayer_connection_linear(x, a_2, b_2, W, bias))
    assert out.shape == x.shape
    assert jnp.allclose(out, ref, atol=1e-4, rtol=1e-4), \
        float(jnp.max(jnp.abs(out - ref)))

    # 2) H=256 with tn=128: exercises the W-streaming (column-block) path and
    #    the zero-pad / no-mask fast paths (H % 128 == 0, M % TM == 0).
    x, a_2, b_2, W, bias, sub = make_case(256)
    ref = _ref_forward(x, sub, a_2, b_2)
    out = jax.block_until_ready(
        sublayer_connection_linear(x, a_2, b_2, W, bias, tn=128))
    assert jnp.allclose(out, ref, atol=1e-4, rtol=1e-4), \
        float(jnp.max(jnp.abs(out - ref)))

    # 3) bf16 MXU matmul option (W + normed in bf16, f32 accumulation).
    out_bf16 = jax.block_until_ready(
        sublayer_connection_linear(x, a_2, b_2, W, bias, tn=128,
                                   matmul_dtype=jnp.bfloat16))
    assert jnp.allclose(out_bf16, ref, atol=5e-2, rtol=5e-2), \
        float(jnp.max(jnp.abs(out_bf16 - ref)))

    # 4) Generic (non-Linear) sublayer path: Pallas LayerNorm + XLA sublayer.
    out_gen = jax.block_until_ready(sublayer_connection(x, sub, a_2, b_2))
    assert jnp.allclose(out_gen, ref, atol=1e-4, rtol=1e-4), \
        float(jnp.max(jnp.abs(out_gen - ref)))

    print("KERNEL_OK")
</pallas_src>

<mosaic_0001>
module attributes {stable_mosaic.version = 11 : i64} {
  func.func @_fused_resident_kernel(%arg0: i32, %arg1: memref<8x128xf32, #tpu.memory_space<vmem>>, %arg2: memref<1x128xf32, #tpu.memory_space<vmem>>, %arg3: memref<1x128xf32, #tpu.memory_space<vmem>>, %arg4: memref<128x128xf32, #tpu.memory_space<vmem>>, %arg5: memref<8x128xf32, #tpu.memory_space<vmem>>) attributes {dimension_semantics = [#tpu.dimension_semantics<parallel>], iteration_bounds = array<i64: 2>, scalar_prefetch = 0 : i64, scratch_operands = 0 : i64, tpu.core_type = #tpu.core_type<tc>, window_params = [{transform_indices = @transform_0, window_bounds = array<i64: 8, 128>}, {pipeline_mode = #tpu.pipeline_mode<synchronous>, transform_indices = @transform_1, window_bounds = array<i64: 1, 128>}, {pipeline_mode = #tpu.pipeline_mode<synchronous>, transform_indices = @transform_2, window_bounds = array<i64: 1, 128>}, {pipeline_mode = #tpu.pipeline_mode<synchronous>, transform_indices = @transform_3, window_bounds = array<i64: 128, 128>}, {transform_indices = @transform_4, window_bounds = array<i64: 8, 128>}]} {
    %c0 = arith.constant 0 : index
    %c0_0 = arith.constant 0 : index
    %0 = vector.load %arg1[%c0, %c0_0] : memref<8x128xf32, #tpu.memory_space<vmem>>, vector<8x128xf32>
    %cst = arith.constant dense<0.000000e+00> : vector<8xf32>
    %1 = vector.multi_reduction <add>, %0, %cst [1] : vector<8x128xf32> to vector<8xf32>
    %2 = vector.shape_cast %1 : vector<8xf32> to vector<8x1xf32>
    %cst_1 = arith.constant 3.125000e-02 : f32
    %3 = vector.broadcast %cst_1 : f32 to vector<8x1xf32>
    %4 = arith.mulf %2, %3 : vector<8x1xf32>
    %5 = vector.broadcast %4 : vector<8x1xf32> to vector<8x128xf32>
    %6 = arith.subf %0, %5 : vector<8x128xf32>
    %7 = arith.mulf %6, %6 : vector<8x128xf32>
    %cst_2 = arith.constant dense<0.000000e+00> : vector<8xf32>
    %8 = vector.multi_reduction <add>, %7, %cst_2 [1] : vector<8x128xf32> to vector<8xf32>
    %9 = vector.shape_cast %8 : vector<8xf32> to vector<8x1xf32>
    %10 = arith.mulf %4, %4 : vector<8x1xf32>
    %cst_3 = arith.constant 9.600000e+01 : f32
    %11 = vector.broadcast %cst_3 : f32 to vector<8x1xf32>
    %12 = arith.mulf %11, %10 : vector<8x1xf32>
    %13 = arith.subf %9, %12 : vector<8x1xf32>
    %cst_4 = arith.constant 0.0322580636 : f32
    %14 = vector.broadcast %cst_4 : f32 to vector<8x1xf32>
    %15 = arith.mulf %13, %14 : vector<8x1xf32>
    %16 = math.sqrt %15 : vector<8x1xf32>
    %cst_5 = arith.constant 9.99999997E-7 : f32
    %17 = vector.broadcast %cst_5 : f32 to vector<8x1xf32>
    %18 = arith.addf %16, %17 : vector<8x1xf32>
    %19 = tpu.reciprocal %18 {approx = true} : vector<8x1xf32> -> vector<8x1xf32>
    %20 = arith.mulf %18, %19 : vector<8x1xf32>
    %cst_6 = arith.constant 2.000000e+00 : f32
    %21 = vector.broadcast %cst_6 : f32 to vector<8x1xf32>
    %22 = arith.subf %21, %20 : vector<8x1xf32>
    %23 = arith.mulf %19, %22 : vector<8x1xf32>
    %24 = vector.broadcast %23 : vector<8x1xf32> to vector<8x128xf32>
    %25 = arith.mulf %6, %24 : vector<8x128xf32>
    %c0_7 = arith.constant 0 : index
    %c0_8 = arith.constant 0 : index
    %26 = vector.load %arg2[%c0_7, %c0_8] : memref<1x128xf32, #tpu.memory_space<vmem>>, vector<1x128xf32>
    %27 = vector.broadcast %26 : vector<1x128xf32> to vector<8x128xf32>
    %28 = arith.mulf %25, %27 : vector<8x128xf32>
    %c0_9 = arith.constant 0 : index
    %c0_10 = arith.constant 0 : index
    %29 = vector.load %arg4[%c0_9, %c0_10] : memref<128x128xf32, #tpu.memory_space<vmem>>, vector<128x128xf32>
    %cst_11 = arith.constant dense<0.000000e+00> : vector<8x128xf32>
    %30 = tpu.matmul %28, %29, %cst_11 {dimension_numbers = #tpu.dot_dimension_numbers<[1], [0], [0], [1], [0, 0, 1, 1], [], []>} : vector<8x128xf32>, vector<128x128xf32>, vector<8x128xf32> -> vector<8x128xf32>
    %c0_12 = arith.constant 0 : index
    %c0_13 = arith.constant 0 : index
    %31 = vector.load %arg3[%c0_12, %c0_13] : memref<1x128xf32, #tpu.memory_space<vmem>>, vector<1x128xf32>
    %32 = vector.broadcast %31 : vector<1x128xf32> to vector<8x128xf32>
    %33 = arith.addf %30, %32 : vector<8x128xf32>
    %c0_14 = arith.constant 0 : index
    %c0_15 = arith.constant 0 : index
    %34 = vector.load %arg1[%c0_14, %c0_15] : memref<8x128xf32, #tpu.memory_space<vmem>>, vector<8x128xf32>
    %35 = arith.addf %34, %33 : vector<8x128xf32>
    %c0_16 = arith.constant 0 : index
    %c0_17 = arith.constant 0 : index
    %36 = vector.load %arg5[%c0_16, %c0_17] : memref<8x128xf32, #tpu.memory_space<vmem>>, vector<8x128xf32>
    tpu.vector_store %arg5[%c0_16, %c0_17], %35 {strides = array<i32>} : memref<8x128xf32, #tpu.memory_space<vmem>>, vector<8x128xf32>,
    return
  }
  func.func @transform_0(%arg0: i32) -> (i32, i32) {
    %c0_i32 = arith.constant 0 : i32
    %c0_i32_0 = arith.constant 0 : i32
    return %arg0, %c0_i32 : i32, i32
  }
  func.func @transform_1(%arg0: i32) -> (i32, i32) {
    %c0_i32 = arith.constant 0 : i32
    %c0_i32_0 = arith.constant 0 : i32
    %c0_i32_1 = arith.constant 0 : i32
    return %c0_i32, %c0_i32_0 : i32, i32
  }
  func.func @transform_2(%arg0: i32) -> (i32, i32) {
    %c0_i32 = arith.constant 0 : i32
    %c0_i32_0 = arith.constant 0 : i32
    %c0_i32_1 = arith.constant 0 : i32
    return %c0_i32, %c0_i32_0 : i32, i32
  }
  func.func @transform_3(%arg0: i32) -> (i32, i32) {
    %c0_i32 = arith.constant 0 : i32
    %c0_i32_0 = arith.constant 0 : i32
    %c0_i32_1 = arith.constant 0 : i32
    return %c0_i32, %c0_i32_0 : i32, i32
  }
  func.func @transform_4(%arg0: i32) -> (i32, i32) {
    %c0_i32 = arith.constant 0 : i32
    %c0_i32_0 = arith.constant 0 : i32
    return %arg0, %c0_i32 : i32, i32
  }
}

</mosaic_0001>

<bundles_post_ra>
// kernel: tpu_custom_call.1
= control target key start
LH: loop header
LB: loop body
LE: loop exit
PB: predicated region body
PF: predicated region fallthrough
CT: control target
= control target key end

     0   :  { %9 = vsyncpa [#allocation3], 0  ;;  %s987_s0 = inlined_call_operand.hbm [shape: f32[16,128], index: 0, kind: input, shape index: {}]   ;;  %s988_s1 = inlined_call_operand.vmem [shape: f32[1,128], index: 1, kind: input, shape index: {}]   ;;  %s989_s2 = inlined_call_operand.vmem [shape: f32[1,128], index: 2, kind: input, shape index: {}]   ;;  %s990_s3 = inlined_call_operand.hbm [shape: f32[128,128], index: 3, kind: input, shape index: {}]   ;;  %s991_s4 = inlined_call_operand.hbm [shape: f32[16,128], index: 4, kind: output, shape index: {}]  }
   0x1   :  { %11 = vsyncpa [#allocation3 + $0x1], 0 }
   0x2   :  { %12 = vsyncpa [#allocation6], 0 }
   0x3   :  { %13 = vsyncpa [#allocation4], 0 }
   0x4   :  { %15 = vsyncpa [#allocation4 + $0x1], 0  ;;  %s771_s15 = smov 0   ;;  %s773_s16 = smov 0  }
   0x5   :  { %s775_s17 = smov 0   ;;  %s777_s18 = smov 0  }
   0x6 LB: > { %s792_s19 = sadd.s32 4294967295, %s736_s18   ;;  %s450_s20 = sadd.s32 4294967294, %s736_s18   ;;  %s736_s18 = sphi %s777_s18, %s1011_s18   ;;  %s732_s17 = sphi %s775_s17, %s1010_s17   ;;  %s728_s16 = sphi %s773_s16, %s1009_s16   ;;  %s724_s15 = sphi %s771_s15, %s1008_s15  }
   0x7   : > { %p41_p0 = scmp.ne.s32.totalorder %s728_s16, %s724_s15  ;;  %p992_p1 = scmp.eq.s32.totalorder %s792_s19, 0 }
   0x8   : > { %p134_p3 = scmp.eq.s32.totalorder %s450_s20, 1  ;;  %p451_p5 = scmp.ge.s32.totalorder %s736_s18, 1 }
   0x9   : > { %p801_p4 = por %p992_p1, %p41_p0  ;;  %p141_p7 = scmp.lt.s32.totalorder %s736_s18, 3 }
   0xa   : > { %p806_p6 = por %p134_p3, %p41_p0  ;;  %s738_s24 = smov [#allocation5]  }
   0xb   : > { %s995_s21 = scalar_select %p801_p4, 1, 0 }
   0xc   : > { %s996_s22 = scalar_select %p806_p6, 1, 0 }
   0xd   : > { %p811_p8 = pnand %p451_p5, %p141_p7  ;;  %s159_s25 = sshll.u32 %s738_s24, 4  ;;  %s815_s25 = int_to_ptr.vmem [resolvable:$true] %s159_s25 }
   0xe   : > { %s827_s27 = sadd.s32 1, %s736_s18   ;;  %s28_s28 = sadd.s32 1, %s732_s17 }
   0xf   : > { %s997_s23 = scalar_select %p811_p8, 1, 0 }
  0x10   : > { %p550_p9 = pneg %p811_p8  ;;  %s25_s29 = ssub.s32 %s736_s18, %s827_s27 }
  0x11   : > { %s608_s6 = scalar_lea.hbm %s990_s3, 2048 }
  0x12   : > { %p822_p11 = pnand %p550_p9, %p992_p1  ;;  %p609_p12 = scmp.ne.s32.totalorder %s990_s3, %s608_s6 }
  0x13   : > { %p615_p5 = scmp.lt.u32.totalorder %s608_s6, %s990_s3 }
  0x14   : > { %p610_p13 = pneg %p822_p11 }
  0x16   : > { %p611_p0 = pnand %p610_p13, %p609_p12 }
  0x18   : > { %p612_p3 = pneg %p611_p0 }
  0x1a   : > { %p617_p7 = pnand %p615_p5, %p612_p3 }
  0x1c   : > { %620 = shalt.err (!%p617_p7)
}
  0x1d   : > { %s621_s11 = scalar_lea.vmem %s815_s25, 2048  ;;  %p629_p2 = scmp.lt.s32.totalorder %s815_s25, %s815_s25 }
  0x1e   : > { %p622_p9 = scmp.ne.s32.totalorder %s815_s25, %s621_s11  ;;  %p630_p6 = scmp.lt.s32.totalorder %s621_s11, %s621_s11 }
  0x20   : > { %p624_p10 = pnand %p622_p9, %p610_p13  ;;  %p631_p4 = por %p630_p6, %p629_p2 }
  0x22   : > { %p625_p1 = pneg %p624_p10 }
  0x24   : > { %p632_p8 = pnand %p631_p4, %p625_p1 }
  0x26   : > { %635 = shalt.err (!%p632_p8)
}
  0x27   : > { %s739_s12 = smov 128   ;;  %s740_s13 = smov 8  }
  0x28   : > { %553 = dma.hbm_to_vmem [thread:$0]  (!%p822_p11), %s990_s3, 2048, %s815_s25, [#allocation6], %s739_s12, %s739_s12, %s740_s13  }
  0x29   : > { %p26_p2 = scmp.eq.s32.totalorder %s25_s29, 0  ;;  %p35_p1 = scmp.ne.s32.totalorder %s732_s17, %s728_s16 }
  0x2a   : > { %p36_p4 = scmp.eq.s32.totalorder %s736_s18, 0  ;;  %p563_p6 = scmp.lt.s32.totalorder %s736_s18, 2 }
  0x2b   : > { %s858_s24 = scalar_select %p26_p2, %s732_s17, %s28_s28  }
  0x2c   : > { %p37_p8 = por %p36_p4, %p35_p1  ;;  %p999_p10 = scmp.eq.s32.totalorder %s792_s19, 1 }
  0x2d   : > { %s173_s5 = sand.u32 1, %s732_s17   ;;  %s455_s6 = sshll.u32 %s736_s18, 7 }
  0x2e   : > { %p862_p12 = por %p999_p10, %p35_p1  ;;  %s454_s7 = sshll.u32 %s173_s5, 3 }
  0x2f   : > { %s871_s9 = scalar_lea.hbm %s987_s0, %s455_s6  ;;  %s177_s25 = scalar_lea.vmem [#allocation2], %s454_s7 }
  0x30   : > { %s184_s28 = sshll.u32 %s177_s25, 4  ;;  %p873_p11 = pnand %p563_p6, %p37_p8  ;;  %s877_s28 = int_to_ptr.vmem [resolvable:$true] %s184_s28 }
  0x31   : > { %s174_s10 = scalar_lea.sflag [#allocation3], %s173_s5  ;;  %s636_s11 = scalar_lea.hbm %s871_s9, 128 }
  0x32   : > { %p637_p13 = scmp.ne.s32.totalorder %s871_s9, %s636_s11  ;;  %p638_p0 = pneg %p873_p11 }
  0x33   : > { %s641_s14 = scalar_lea.hbm %s987_s0, 256  ;;  %p642_p7 = scmp.lt.u32.totalorder %s871_s9, %s987_s0 }
  0x34   : > { %p639_p3 = pnand %p638_p0, %p637_p13  ;;  %p643_p9 = scmp.lt.u32.totalorder %s641_s14, %s636_s11 }
  0x35   : > { %p645_p1 = scmp.lt.u32.totalorder %s636_s11, %s871_s9 }
  0x36   : > { %p640_p5 = pneg %p639_p3  ;;  %p644_p2 = por %p643_p9, %p642_p7 }
  0x38   : > { %p646_p4 = por %p645_p1, %p644_p2 }
  0x3a   : > { %p647_p6 = pnand %p646_p4, %p640_p5 }
  0x3c   : > { %650 = shalt.err (!%p647_p6)
}
  0x3d   : > { %s651_s5 = scalar_lea.vmem %s877_s28, 128  ;;  %s741_s7 = smov [#allocation2]  }
  0x3e   : > { %p652_p8 = scmp.ne.s32.totalorder %s877_s28, %s651_s5  ;;  %s656_s26 = sshll.u32 %s741_s7, 4  ;;  %s657_s26 = int_to_ptr.vmem [resolvable:$false] %s656_s26 }
  0x3f   : > { %s658_s8 = scalar_lea.vmem %s657_s26, 256  ;;  %p659_p3 = scmp.lt.s32.totalorder %s877_s28, %s657_s26 }
  0x40   : > { %p654_p10 = pnand %p652_p8, %p638_p0  ;;  %p660_p7 = scmp.lt.s32.totalorder %s658_s8, %s651_s5 }
  0x42   : > { %p655_p13 = pneg %p654_p10  ;;  %p661_p9 = por %p660_p7, %p659_p3 }
  0x44   : > { %p662_p2 = pnand %p661_p9, %p655_p13 }
  0x46   : > { %665 = shalt.err (!%p662_p2)
}
  0x47   : > { %557 = dma.hbm_to_vmem [thread:$0]  (!%p873_p11), %s871_s9, 128, %s877_s28, %s174_s10  }
  0x48   : > { %p1002_p5 = scmp.ne.s32.totalorder %s997_s23, 0 }
  0x49   : > { %s907_s25 = sand.u32 (!%p1002_p5), 1, %s728_s16   ;;  %p1003_p0 = scmp.ne.s32.totalorder (!%p1002_p5), %s995_s21, 0 }
  0x4a   : > { %193 = sbr.rel (%p1002_p5) target bundleno = 648 (0x288), region = 36  ;;  %s457_s11 = sshll.u32 (!%p1002_p5), %s907_s25, 3 }
  0x4b   : > { %s196_s12 = scalar_lea.sflag (!%p1002_p5), [#allocation3], %s907_s25  ;;  %s199_s13 = scalar_lea.vmem (!%p1002_p5), [#allocation2], %s457_s11 }
  0x51   : > { %711 = dma.done.wait (%p1003_p0), %s196_s12, 128  }
  0x52   : > { %713 = vsyncadd (%p1003_p0), %s196_s12, 4294967168  ;;  %p1004_p11 = scmp.eq.s32.totalorder %s792_s19, 0 }
  0x54   : > { %715 = dma.done.wait (%p1004_p11), [#allocation6], 2048   ;;  %p1005_p1 = pmov %p1004_p11 }
  0x55   : > { %v921_v0 = vld [vmem:[%s199_s13] sm:$0xff]  ;;  %v261_v5 = vld [vmem:[#allocation5] sm:$0xff]  ;;  %v262_v6 = vld [vmem:[#allocation5 + $0x8] sm:$0xff]  ;;  %v742_v8 = vmov 0.0|0.0   ;;  %vm743_vm0 = vmmov 0   ;;  %v744_v17 = vmov 0.0  }
  0x56   : > { %717 = vsyncadd (%p1005_p1), [#allocation6], 4294965248  ;;  %229 = vadd.xlane.f32.xlu0 %v921_v0  ;;  %v519_v7 = vpack.c.bf16 %v262_v6, %v261_v5  ;;  %518 = vmatprep.subr.bf16.mxu0 %v742_v8  ;;  %v263_v9 = vld [vmem:[#allocation5 + $0x10] sm:$0xff]  ;;  %v264_v10 = vld [vmem:[#allocation5 + $0x18] sm:$0xff]  ;;  %s463_s29 = sshll.u32 %s792_s19, 7  ;;  %s227_s10 = scalar_lea.vmem [#allocation7], %s457_s11 }
  0x57   : > { %v522_v11 = vpack.c.bf16 %v264_v10, %v263_v9  ;;  %v265_v12 = vld [vmem:[#allocation5 + $0x20] sm:$0xff]  ;;  %v266_v13 = vld [vmem:[#allocation5 + $0x28] sm:$0xff]  ;;  %v267_v15 = vld [vmem:[#allocation5 + $0x30] sm:$0xff]  ;;  %515 = vmatprep.mubr.msk.f32.mxu0 %vm743_vm0, %v744_v17  ;;  %s370_s14 = sshll.u32 %s227_s10, 4  ;;  %s943_s5 = scalar_lea.hbm %s991_s4, %s463_s29  ;;  %s945_s14 = int_to_ptr.vmem [resolvable:$true] %s370_s14 }
  0x58   : > { %520 = vmatpush3.bf16.msra.mxu0 %v519_v7  ;;  %v525_v14 = vpack.c.bf16 %v266_v13, %v265_v12  ;;  %v268_v16 = vld [vmem:[#allocation5 + $0x38] sm:$0xff]  ;;  %v269_v19 = vld [vmem:[#allocation5 + $0x40] sm:$0xff]  ;;  %v270_v20 = vld [vmem:[#allocation5 + $0x48] sm:$0xff]  ;;  %s357_s7 = scalar_lea.sflag [#allocation4], %s907_s25  ;;  %s666_s19 = scalar_lea.vmem %s945_s14, 128 }
  0x59   : > { %521 = vmatprep.subr.bf16.mxu0 %v742_v8  ;;  %v528_v18 = vpack.c.bf16 %v268_v16, %v267_v15  ;;  %v531_v21 = vpack.c.bf16 %v270_v20, %v269_v19  ;;  %v271_v22 = vld [vmem:[#allocation5 + $0x50] sm:$0xff]  ;;  %v272_v23 = vld [vmem:[#allocation5 + $0x58] sm:$0xff]  ;;  %v273_v25 = vld [vmem:[#allocation5 + $0x60] sm:$0xff]  ;;  %p667_p4 = scmp.ne.s32.totalorder %s945_s14, %s666_s19  ;;  %s745_s26 = smov [#allocation7]  }
  0x5a   : > { %v534_v24 = vpack.c.bf16 %v272_v23, %v271_v22  ;;  %v274_v26 = vld [vmem:[#allocation5 + $0x68] sm:$0xff]  ;;  %v275_v28 = vld [vmem:[#allocation5 + $0x70] sm:$0xff]  ;;  %v276_v29 = vld [vmem:[#allocation5 + $0x78] sm:$0xff]  ;;  %s670_s8 = sshll.u32 %s745_s26, 4  ;;  %s671_s8 = int_to_ptr.vmem [resolvable:$false] %s670_s8 }
  0x5b   : > { %v537_v27 = vpack.c.bf16 %v274_v26, %v273_v25  ;;  %v540_v30 = vpack.c.bf16 %v276_v29, %v275_v28  ;;  %v460_v46 = vld [vmem:[%s988_s1] ss:$0 sm:$0xff]  ;;  %p668_p6 = pnand %p667_p4, %p862_p12  ;;  %s672_s11 = scalar_lea.vmem %s671_s8, 256 }
  0x5c   : > { %523 = vmatpush3.bf16.msra.mxu0 %v522_v11  ;;  %v461_v49 = vld [vmem:[%s989_s2] ss:$0 sm:$0xff]  ;;  %p673_p10 = scmp.lt.s32.totalorder %s945_s14, %s671_s8  ;;  %p674_p13 = scmp.lt.s32.totalorder %s672_s11, %s666_s19 }
  0x5d   : > { %524 = vmatprep.subr.bf16.mxu0 %v742_v8  ;;  %p669_p8 = pneg %p668_p6 }
  0x5e   : > { %p675_p3 = por %p674_p13, %p673_p10 }
  0x60   : > { %526 = vmatpush3.bf16.msra.mxu0 %v525_v14  ;;  %p676_p7 = pnand %p675_p3, %p669_p8 }
  0x61   : > { %527 = vmatprep.subr.bf16.mxu0 %v742_v8 }
  0x64   : > { %529 = vmatpush3.bf16.msra.mxu0 %v528_v18 }
  0x65   : > { %530 = vmatprep.subr.bf16.mxu0 %v742_v8 }
  0x68   : > { %532 = vmatpush3.bf16.msra.mxu0 %v531_v21 }
  0x69   : > { %533 = vmatprep.subr.bf16.mxu0 %v742_v8 }
  0x6c   : > { %535 = vmatpush3.bf16.msra.mxu0 %v534_v24 }
  0x6d   : > { %536 = vmatprep.subr.bf16.mxu0 %v742_v8 }
  0x70   : > { %538 = vmatpush3.bf16.msra.mxu0 %v537_v27 }
  0x71   : > { %539 = vmatprep.subr.bf16.mxu0 %v742_v8 }
  0x74   : > { %541 = vmatpush3.bf16.msra.mxu0 %v540_v30 }
  0xe3   : > { %v230_v1 = vpop.xlane.xlu0 %229 }
  0xe4   : > { %v231_v2 = vmul.f32 0.03125, %v230_v1 }
  0xe6   : > { %v925_v3 = vsub.f32 %v921_v0, %v231_v2  ;;  %v236_v31 = vmul.f32 %v231_v2, %v231_v2 }
  0xe8   : > { %v233_v4 = vmul.f32 %v925_v3, %v925_v3  ;;  %v237_v32 = vmul.f32 96.0, %v236_v31 }
  0xea   : > { %234 = vadd.xlane.f32.xlu0 %v233_v4 }
 0x177   : > { %v235_v33 = vpop.xlane.xlu0 %234 }
 0x178   : > { %v238_v34 = vsub.f32 %v235_v33, %v237_v32 }
 0x17a   : > { %v239_v35 = vmul.f32 0.032258064, %v238_v34 }
 0x17c   : > { %604 = vrsqrt.f32 %v239_v35  ;;  %vm242_vm1 = vcmp.eq.f32.partialorder %v239_v35, inf  ;;  %v245_v38 = vand.u32 2147483648, %v239_v35  ;;  %vm244_vm2 = vcmp.eq.f32.partialorder %v239_v35, 0.0 }
 0x186   : > { %v605_v36 = vpop.eup %604 }
 0x187   : > { %v241_v37 = vmul.f32 %v605_v36, %v239_v35 }
 0x189   : > { %v243_v39 = vsel %vm242_vm1, %v239_v35, %v241_v37 }
 0x18a   : > { %v246_v40 = vsel %vm244_vm2, %v245_v38, %v243_v39 }
 0x18b   : > { %v247_v41 = vadd.f32 1e-06, %v246_v40 }
 0x18d   : > { %606 = vrcp.f32 %v247_v41 }
 0x197   : > { %v607_v42 = vpop.eup %606 }
 0x198   : > { %v249_v43 = vmul.f32 %v607_v42, %v247_v41 }
 0x19a   : > { %v250_v44 = vsub.f32 2.0, %v249_v43 }
 0x19c   : > { %v251_v45 = vmul.f32 %v607_v42, %v250_v44 }
 0x19e   : > { %v252_v47 = vmul.f32 %v251_v45, %v925_v3 }
 0x1a0   : > { %v260_v48 = vmul.f32 %v460_v46, %v252_v47 }
 0x1a2   : > { %516 = vmatmul.mubr.f32.vlgmr.msra.gmra.mrb[0].mxu0 %v260_v48 }
 0x275   : > { %v350_v50 = vpop.f32.mrb[0].mxu0 }
 0x276   : > { %v351_v51 = vadd.f32 %v461_v49, %v350_v50  ;;  %v517_v52 = vpop.f32.mrb[1].mxu0 }
 0x278   : > { %v354_v53 = vadd.f32 %v351_v51, %v921_v0 }
 0x27a   : > { %355 = vst [vmem:[%s227_s10] sm:$0xff] %v354_v53 }
 0x27b   : > { %679 = shalt.err (!%p676_p7)
}
 0x27c   : > { %s680_s25 = scalar_lea.hbm %s943_s5, 128  ;;  %s684_s21 = scalar_lea.hbm %s991_s4, 256 }
 0x27d   : > { %p681_p9 = scmp.ne.s32.totalorder %s943_s5, %s680_s25  ;;  %p685_p0 = scmp.lt.u32.totalorder %s943_s5, %s991_s4 }
 0x27e   : > { %p686_p11 = scmp.lt.u32.totalorder %s684_s21, %s680_s25  ;;  %p688_p4 = scmp.lt.u32.totalorder %s680_s25, %s943_s5 }
 0x27f   : > { %p682_p2 = pnand %p681_p9, %p862_p12 }
 0x280   : > { %p687_p1 = por %p686_p11, %p685_p0 }
 0x281   : > { %p683_p5 = pneg %p682_p2 }
 0x282   : > { %p689_p6 = por %p688_p4, %p687_p1 }
 0x284   : > { %p690_p8 = pnand %p689_p6, %p683_p5 }
 0x286   : > { %693 = shalt.err (!%p690_p8)
}
 0x287   : > { %548 = dma.vmem_to_hbm [thread:$0]  (%p862_p12), %s945_s14, 128, %s943_s5, %s357_s7  }
 0x288 PF: > { %s382_s28 = sand.u32 1, %s724_s15   ;;  %p1006_p10 = scmp.ne.s32.totalorder %s996_s22, 0 }
 0x289   : > { %p1007_p13 = scmp.ge.s32.totalorder %s736_s18, 2  ;;  %s383_s29 = scalar_lea.sflag [#allocation4], %s382_s28 }
 0x28b   : > { %p559_p3 = pnand %p1007_p13, %p1006_p10 }
 0x28d   : > { %719 = dma.done.wait (!%p559_p3), %s383_s29, 128  }
 0x28e   : > { %721 = vsyncadd (!%p559_p3), %s383_s29, 4294967168  ;;  %p18_p7 = scmp.ge.s32.totalorder %s827_s27, 4   ;;  %s1008_s15 = smov %s728_s16 }
 0x28f   : > { %s1009_s16 = smov %s732_s17  ;;  %s1010_s17 = smov %s858_s24 }
 0x290   : > { %s1011_s18 = smov %s827_s27  ;;  %20 = sbr.rel (!%p18_p7) target bundleno = 6 (0x6), region = 85 }
 0x297   :  { %388 = vsyncpa [#allocation3], 1 }
 0x298   :  { %390 = vsyncpa [#allocation3 + $0x1], 1 }
 0x299   :  { %391 = vsyncpa [#allocation6], 1 }
 0x29a   :  { %392 = vsyncpa [#allocation4], 1 }
 0x29b   :  { %394 = vsyncpa [#allocation4 + $0x1], 1 }

</bundles_post_ra>
